<compile_context>
chip_gen: v7x
topology: tpu7x:2x2x1
jax: 0.10.0
libtpu: 0.0.40
codegen_flags: <defaults>
</compile_context>

<pallas_src>
import functools

import jax
import jax.numpy as jnp
from jax.experimental import pallas as pl
from jax.experimental.pallas import tpu as pltpu

LANE = 128
SUBLANE = 8


def _round_up(x, m):
    return (x + m - 1) // m * m


def _pick_tile_hw(hw, max_tile=2048):
    """Largest HW tile that divides hw and is a multiple of 8 (<= max_tile)."""
    if hw % SUBLANE == 0 and hw <= max_tile:
        return hw
    for cand in range(min(max_tile, hw), 0, -1):
        if hw % cand == 0 and cand % SUBLANE == 0:
            return cand
    # TODO(synk): pad H*W rows + mask the pool instead of failing.
    raise ValueError(f"H*W={hw} has no multiple-of-{SUBLANE} tile; pad HW.")


# -----------------------------------------------------------------------------
# Fused kernel: conv(im2col matmul, BN scale folded) + shift + ReLU
#               + global-avg-pool + fc_last
#
# Grid: (B, HW // TILE_HW); batch axis "parallel" (megacore on v7x when B>=2),
# HW axis "arbitrary" (pooling reduction into the VMEM accumulator).
#   patches : [B*HW, CK]   bf16   tiled (TILE_HW, CK), CK = C*9 (no HBM K-pad)
#   conv_w  : [CK, Fp]     bf16   resident, single-buffered (BN scale folded)
#   shift   : [1, Fp]      f32    resident (beta + scale*(conv_b - mean))
#   fc_w_t  : [Fp, NCp]    bf16   resident (fc_last.weight.T, zero padded)
#   fc_b    : [1, NCp]     f32    resident
# Outputs (written on the last HW tile of each batch row):
#   logits  : [B, 1, NCp]  f32
#   feat    : [B, 1, Fp]   f32
# Scratch:
#   acc     : [8, Fp]      f32    per-sublane partial pool sums
# -----------------------------------------------------------------------------
def _fused_kernel(p_ref, w_ref, shift_ref, wfc_ref, bfc_ref,
                  logits_ref, feat_ref, acc_ref, *, inv_hw):
    j = pl.program_id(1)

    @pl.when(j == 0)
    def _():
        acc_ref[...] = jnp.zeros_like(acc_ref)

    # Conv as matmul on the MXU (bf16 in, f32 acc); BN scale is pre-folded
    # into w_ref columns, so the epilogue is just +shift and ReLU (VPU).
    y = jnp.dot(p_ref[...], w_ref[...], preferred_element_type=jnp.float32)
    y = jnp.maximum(y + shift_ref[...], 0.0)              # (TILE_HW, Fp) f32

    # Fused global average pool: per-step partial sums are plain VPU adds into
    # an (8, Fp) accumulator; the cross-sublane (XLU) reduce happens once per
    # batch row in the finalize block below.
    th, fp = y.shape
    acc_ref[...] += jnp.sum(y.reshape(th // SUBLANE, SUBLANE, fp), axis=0)

    @pl.when(j == pl.num_programs(1) - 1)
    def _():
        feat = jnp.sum(acc_ref[...], axis=0, keepdims=True) * inv_hw  # (1, Fp)
        feat_ref[0] = feat
        logits_ref[0] = (
            jnp.dot(feat.astype(wfc_ref.dtype), wfc_ref[...],
                    preferred_element_type=jnp.float32)
            + bfc_ref[...]
        )


def fused_conv_bn_relu_pool_fc(patches, conv_w, bn_shift, fc_w_t, fc_b,
                               *, batch, hw, tile_hw=None):
    n, ck = patches.shape
    assert n == batch * hw
    fp = conv_w.shape[1]
    ncp = fc_w_t.shape[1]
    if tile_hw is None or hw % tile_hw != 0 or tile_hw % SUBLANE != 0:
        tile_hw = _pick_tile_hw(hw)
    nj = hw // tile_hw

    kernel = functools.partial(_fused_kernel, inv_hw=1.0 / float(hw))

    in_specs = [
        # Row tile of im2col patches for (batch b, hw-tile j).  Last dim CK is
        # the full array extent -> legal block; Mosaic lane-pads it in VMEM.
        pl.BlockSpec((tile_hw, ck), lambda b, j: (b * nj + j, 0)),
        # Grid-invariant operands: resident in VMEM, single-buffered.
        pl.BlockSpec((ck, fp), lambda b, j: (0, 0),
                     pipeline_mode=pl.Buffered(1)),
        pl.BlockSpec((1, fp), lambda b, j: (0, 0),
                     pipeline_mode=pl.Buffered(1)),
        pl.BlockSpec((fp, ncp), lambda b, j: (0, 0),
                     pipeline_mode=pl.Buffered(1)),
        pl.BlockSpec((1, ncp), lambda b, j: (0, 0),
                     pipeline_mode=pl.Buffered(1)),
    ]
    out_specs = (
        pl.BlockSpec((1, 1, ncp), lambda b, j: (b, 0, 0)),   # logits
        pl.BlockSpec((1, 1, fp), lambda b, j: (b, 0, 0)),    # feat
    )
    out_shape = (
        jax.ShapeDtypeStruct((batch, 1, ncp), jnp.float32),
        jax.ShapeDtypeStruct((batch, 1, fp), jnp.float32),
    )
    return pl.pallas_call(
        kernel,
        grid=(batch, nj),
        in_specs=in_specs,
        out_specs=out_specs,
        out_shape=out_shape,
        scratch_shapes=[pltpu.VMEM((SUBLANE, fp), jnp.float32)],
        compiler_params=pltpu.CompilerParams(
            # Batch rows independent -> split across TensorCores on v7x when
            # B >= 2 per chip; the HW axis is the pooling reduction.
            # TODO(synk): if per-chip B == 1, split the HW axis across cores
            # with per-core partial pool sums + a tiny combine instead.
            dimension_semantics=("parallel", "arbitrary"),
            # v7x has 64 MiB physical VMEM -> keep the scoped limit <= ~48 MiB;
            # this is also above the 32 MiB default on v5e/v6e (128 MiB parts),
            # so larger tiles can compile on every generation.
            vmem_limit_bytes=48 * 1024 * 1024,
        ),
    )(patches, conv_w, bn_shift, fc_w_t, fc_b)


# -----------------------------------------------------------------------------
# JAX glue: im2col (3x3, pad 1, stride 1), emitted in NHWC / (C, kh, kw) order
# without a large transpose pass and WITHOUT zero-padding the contraction dim
# in HBM (the kernel block uses the full CK extent).
# TODO(synk): at real backbone sizes, replace materialized im2col (9x HBM
# expansion) with implicit in-kernel im2col (9 accumulated dots over shifted
# NHWC row-tiles).
# -----------------------------------------------------------------------------
def im2col_3x3_nhwc(x_nchw):
    # (B, C, H, W) -> (B*H*W, C*9); feature order (C, kh, kw) matches a
    # flattened PyTorch Conv2d weight.
    B, C, H, W = x_nchw.shape
    x = jnp.transpose(x_nchw, (0, 2, 3, 1))                 # small NCHW->NHWC
    xp = jnp.pad(x, ((0, 0), (1, 1), (1, 1), (0, 0)))
    cols = [xp[:, di:di + H, dj:dj + W, :]                  # (B, H, W, C)
            for di in range(3) for dj in range(3)]
    p = jnp.stack(cols, axis=-1)                            # (B, H, W, C, 9)
    return p.reshape(B * H * W, C * 9)


# -----------------------------------------------------------------------------
# ModelWrapperV4 forward: returns (logits, feat)
# -----------------------------------------------------------------------------
def model_wrapper_v4_forward(x, params, *, dim_feat, num_classes, tile_hw=None):
    B, C, H, W = x.shape
    hw = H * W

    patches = im2col_3x3_nhwc(x).astype(jnp.bfloat16)        # (B*HW, C*9) bf16

    logits_p, feat_p = fused_conv_bn_relu_pool_fc(
        patches, params["conv_w"], params["bn_shift"],
        params["fc_w_t"], params["fc_b"], batch=B, hw=hw, tile_hw=tile_hw)

    logits = logits_p[:, 0, :num_classes]                    # un-pad classes
    feat = feat_p[:, 0, :dim_feat]                           # un-pad features
    return logits, feat                                      # == (output, feat)


def make_params(key, c_in, dim_feat, num_classes):
    k1, k2, k3, k4 = jax.random.split(key, 4)
    ck = c_in * 9
    fp = _round_up(dim_feat, LANE)
    ncp = _round_up(num_classes, LANE)

    # Conv2d(c_in, dim_feat, 3, padding=1) weight flattened to (CK, F)
    # (feature order (C, kh, kw), matching im2col_3x3_nhwc) + conv bias.
    conv_w = jax.random.normal(k1, (ck, dim_feat), jnp.float32) * 0.1
    conv_b = jax.random.normal(k4, (dim_feat,), jnp.float32) * 0.01

    # BatchNorm2d(dim_feat) inference params, folded (conv bias folded too).
    gamma = jnp.ones((dim_feat,), jnp.float32)
    beta = jnp.zeros((dim_feat,), jnp.float32)
    run_mean = 0.05 * jnp.arange(dim_feat, dtype=jnp.float32)
    run_var = jnp.ones((dim_feat,), jnp.float32) + 0.01 * jnp.arange(
        dim_feat, dtype=jnp.float32)
    eps = 1e-5
    scale = gamma / jnp.sqrt(run_var + eps)
    shift = beta + scale * (conv_b - run_mean)

    # fc_last: Linear(dim_feat, num_classes); store W.T for the matmul.
    fc_w = jax.random.normal(k2, (num_classes, dim_feat), jnp.float32) * 0.1
    fc_b = jax.random.normal(k3, (num_classes,), jnp.float32) * 0.01

    # Fold the BN scale into the conv weight columns (per-step epilogue is
    # then just +shift, ReLU).  Pad feature/class dims to lane width: padded
    # feature columns have zero weight and zero shift so they stay exactly
    # zero through conv -> +shift -> ReLU -> pool -> fc; padded class columns
    # are zero.  The contraction dim CK is NOT padded.
    conv_w_scaled = conv_w * scale[None, :]
    conv_w_p = (jnp.zeros((ck, fp), jnp.float32)
                .at[:, :dim_feat].set(conv_w_scaled))
    shift_p = jnp.zeros((1, fp), jnp.float32).at[0, :dim_feat].set(shift)
    fc_w_t_p = (jnp.zeros((fp, ncp), jnp.float32)
                .at[:dim_feat, :num_classes].set(fc_w.T))
    fc_b_p = jnp.zeros((1, ncp), jnp.float32).at[0, :num_classes].set(fc_b)

    return {
        "conv_w": conv_w_p.astype(jnp.bfloat16),   # (CK, Fp), BN scale folded
        "bn_shift": shift_p,                       # (1, Fp)  f32
        "fc_w_t": fc_w_t_p.astype(jnp.bfloat16),   # (Fp, NCp)
        "fc_b": fc_b_p,                            # (1, NCp) f32
    }


def _reference_forward(x, params, dim_feat, num_classes):
    B, C, H, W = x.shape
    patches = im2col_3x3_nhwc(x).astype(jnp.bfloat16).astype(jnp.float32)
    y = patches @ params["conv_w"].astype(jnp.float32)
    y = jnp.maximum(y + params["bn_shift"], 0.0)
    feat = y.reshape(B, H * W, -1).mean(axis=1)
    logits = (feat.astype(jnp.bfloat16).astype(jnp.float32)
              @ params["fc_w_t"].astype(jnp.float32) + params["fc_b"])
    return logits[:, :num_classes], feat[:, :dim_feat]


if __name__ == "__main__":
    B, C, H, W = 2, 4, 16, 16
    DIM_FEAT = 32
    NUM_CLASSES = 10

    key = jax.random.PRNGKey(0)
    kx, kp = jax.random.split(key)
    x = jax.random.normal(kx, (B, C, H, W), jnp.float32)
    params = make_params(kp, C, DIM_FEAT, NUM_CLASSES)

    # tile_hw=None -> full HW row per tile (256), no tiny overhead-bound tiles.
    fwd = jax.jit(functools.partial(
        model_wrapper_v4_forward, dim_feat=DIM_FEAT, num_classes=NUM_CLASSES))
    logits, feat = fwd(x, params)
    jax.block_until_ready((logits, feat))

    assert logits.shape == (B, NUM_CLASSES)
    assert feat.shape == (B, DIM_FEAT)

    ref_logits, ref_feat = _reference_forward(x, params, DIM_FEAT, NUM_CLASSES)
    assert jnp.allclose(logits, ref_logits, rtol=2e-2, atol=2e-2)
    assert jnp.allclose(feat, ref_feat, rtol=2e-2, atol=2e-2)

    print("KERNEL_OK")
</pallas_src>

<mosaic_0001>
module attributes {stable_mosaic.version = 11 : i64} {
  func.func @_fused_kernel(%arg0: i32, %arg1: i32, %arg2: memref<256x36xbf16, #tpu.memory_space<vmem>>, %arg3: memref<36x128xbf16, #tpu.memory_space<vmem>>, %arg4: memref<1x128xf32, #tpu.memory_space<vmem>>, %arg5: memref<128x128xbf16, #tpu.memory_space<vmem>>, %arg6: memref<1x128xf32, #tpu.memory_space<vmem>>, %arg7: memref<1x1x128xf32, #tpu.memory_space<vmem>>, %arg8: memref<1x1x128xf32, #tpu.memory_space<vmem>>, %arg9: memref<8x128xf32, #tpu.memory_space<vmem>>) attributes {dimension_semantics = [#tpu.dimension_semantics<parallel>, #tpu.dimension_semantics<arbitrary>], iteration_bounds = array<i64: 2, 1>, scalar_prefetch = 0 : i64, scratch_operands = 1 : i64, tpu.core_type = #tpu.core_type<tc>, window_params = [{transform_indices = @transform_0, window_bounds = array<i64: 256, 36>}, {pipeline_mode = #tpu.pipeline_mode<synchronous>, transform_indices = @transform_1, window_bounds = array<i64: 36, 128>}, {pipeline_mode = #tpu.pipeline_mode<synchronous>, transform_indices = @transform_2, window_bounds = array<i64: 1, 128>}, {pipeline_mode = #tpu.pipeline_mode<synchronous>, transform_indices = @transform_3, window_bounds = array<i64: 128, 128>}, {pipeline_mode = #tpu.pipeline_mode<synchronous>, transform_indices = @transform_4, window_bounds = array<i64: 1, 128>}, {transform_indices = @transform_5, window_bounds = array<i64: 1, 1, 128>}, {transform_indices = @transform_6, window_bounds = array<i64: 1, 1, 128>}]} {
    %c0_i32 = arith.constant 0 : i32
    %0 = arith.cmpi eq, %arg1, %c0_i32 : i32
    %1 = arith.extui %0 : i1 to i32
    %c0_i32_0 = arith.constant 0 : i32
    %2 = arith.cmpi ne, %1, %c0_i32_0 : i32
    scf.if %2 {
      %cst_14 = arith.constant 0.000000e+00 : f32
      %19 = vector.broadcast %cst_14 : f32 to vector<8x128xf32>
      %c0_15 = arith.constant 0 : index
      %c0_16 = arith.constant 0 : index
      %20 = vector.load %arg9[%c0_15, %c0_16] : memref<8x128xf32, #tpu.memory_space<vmem>>, vector<8x128xf32>
      tpu.vector_store %arg9[%c0_15, %c0_16], %19 {strides = array<i32>} : memref<8x128xf32, #tpu.memory_space<vmem>>, vector<8x128xf32>,
    } else {
    }
    %c0 = arith.constant 0 : index
    %c0_1 = arith.constant 0 : index
    %3 = vector.load %arg2[%c0, %c0_1] : memref<256x36xbf16, #tpu.memory_space<vmem>>, vector<256x36xbf16>
    %c0_2 = arith.constant 0 : index
    %c0_3 = arith.constant 0 : index
    %4 = vector.load %arg3[%c0_2, %c0_3] : memref<36x128xbf16, #tpu.memory_space<vmem>>, vector<36x128xbf16>
    %cst = arith.constant dense<0.000000e+00> : vector<256x128xf32>
    %5 = tpu.matmul %3, %4, %cst {dimension_numbers = #tpu.dot_dimension_numbers<[1], [0], [0], [1], [0, 0, 1, 1], [], []>} : vector<256x36xbf16>, vector<36x128xbf16>, vector<256x128xf32> -> vector<256x128xf32>
    %c0_4 = arith.constant 0 : index
    %c0_5 = arith.constant 0 : index
    %6 = vector.load %arg4[%c0_4, %c0_5] : memref<1x128xf32, #tpu.memory_space<vmem>>, vector<1x128xf32>
    %7 = vector.broadcast %6 : vector<1x128xf32> to vector<256x128xf32>
    %8 = arith.addf %5, %7 : vector<256x128xf32>
    %cst_6 = arith.constant 0.000000e+00 : f32
    %9 = vector.broadcast %cst_6 : f32 to vector<256x128xf32>
    %10 = arith.maximumf %8, %9 : vector<256x128xf32>
    %c0_7 = arith.constant 0 : index
    %c0_8 = arith.constant 0 : index
    %11 = vector.load %arg9[%c0_7, %c0_8] : memref<8x128xf32, #tpu.memory_space<vmem>>, vector<8x128xf32>
    %12 = vector.shape_cast %10 : vector<256x128xf32> to vector<32x8x128xf32>
    %cst_9 = arith.constant dense<0.000000e+00> : vector<8x128xf32>
    %13 = vector.multi_reduction <add>, %12, %cst_9 [0] : vector<32x8x128xf32> to vector<8x128xf32>
    %14 = arith.addf %11, %13 : vector<8x128xf32>
    %c0_10 = arith.constant 0 : index
    %c0_11 = arith.constant 0 : index
    %15 = vector.load %arg9[%c0_10, %c0_11] : memref<8x128xf32, #tpu.memory_space<vmem>>, vector<8x128xf32>
    tpu.vector_store %arg9[%c0_10, %c0_11], %14 {strides = array<i32>} : memref<8x128xf32, #tpu.memory_space<vmem>>, vector<8x128xf32>,
    %c0_i32_12 = arith.constant 0 : i32
    %16 = arith.cmpi eq, %arg1, %c0_i32_12 : i32
    %17 = arith.extui %16 : i1 to i32
    %c0_i32_13 = arith.constant 0 : i32
    %18 = arith.cmpi ne, %17, %c0_i32_13 : i32
    scf.if %18 {
      %c0_14 = arith.constant 0 : index
      %c0_15 = arith.constant 0 : index
      %19 = vector.load %arg9[%c0_14, %c0_15] : memref<8x128xf32, #tpu.memory_space<vmem>>, vector<8x128xf32>
      %cst_16 = arith.constant dense<0.000000e+00> : vector<128xf32>
      %20 = vector.multi_reduction <add>, %19, %cst_16 [0] : vector<8x128xf32> to vector<128xf32>
      %21 = vector.shape_cast %20 : vector<128xf32> to vector<1x128xf32>
      %cst_17 = arith.constant 3.906250e-03 : f32
      %22 = vector.broadcast %cst_17 : f32 to vector<1x128xf32>
      %23 = arith.mulf %21, %22 : vector<1x128xf32>
      %c0_18 = arith.constant 0 : index
      %c0_19 = arith.constant 0 : index
      %c0_20 = arith.constant 0 : index
      %24 = vector.load %arg8[%c0_18, %c0_19, %c0_20] : memref<1x1x128xf32, #tpu.memory_space<vmem>>, vector<1x1x128xf32>
      %25 = vector.shape_cast %24 : vector<1x1x128xf32> to vector<1x128xf32>
      %26 = vector.shape_cast %23 : vector<1x128xf32> to vector<1x1x128xf32>
      tpu.vector_store %arg8[%c0_18, %c0_19, %c0_20], %26 {strides = array<i32>} : memref<1x1x128xf32, #tpu.memory_space<vmem>>, vector<1x1x128xf32>,
      %27 = arith.truncf %23 : vector<1x128xf32> to vector<1x128xbf16>
      %c0_21 = arith.constant 0 : index
      %c0_22 = arith.constant 0 : index
      %28 = vector.load %arg5[%c0_21, %c0_22] : memref<128x128xbf16, #tpu.memory_space<vmem>>, vector<128x128xbf16>
      %cst_23 = arith.constant dense<0.000000e+00> : vector<1x128xf32>
      %29 = tpu.matmul %27, %28, %cst_23 {dimension_numbers = #tpu.dot_dimension_numbers<[1], [0], [0], [1], [0, 0, 1, 1], [], []>} : vector<1x128xbf16>, vector<128x128xbf16>, vector<1x128xf32> -> vector<1x128xf32>
      %c0_24 = arith.constant 0 : index
      %c0_25 = arith.constant 0 : index
      %30 = vector.load %arg6[%c0_24, %c0_25] : memref<1x128xf32, #tpu.memory_space<vmem>>, vector<1x128xf32>
      %31 = arith.addf %29, %30 : vector<1x128xf32>
      %c0_26 = arith.constant 0 : index
      %c0_27 = arith.constant 0 : index
      %c0_28 = arith.constant 0 : index
      %32 = vector.load %arg7[%c0_26, %c0_27, %c0_28] : memref<1x1x128xf32, #tpu.memory_space<vmem>>, vector<1x1x128xf32>
      %33 = vector.shape_cast %32 : vector<1x1x128xf32> to vector<1x128xf32>
      %34 = vector.shape_cast %31 : vector<1x128xf32> to vector<1x1x128xf32>
      tpu.vector_store %arg7[%c0_26, %c0_27, %c0_28], %34 {strides = array<i32>} : memref<1x1x128xf32, #tpu.memory_space<vmem>>, vector<1x1x128xf32>,
    } else {
    }
    return
  }
  func.func @transform_0(%arg0: i32, %arg1: i32) -> (i32, i32) {
    %c1_i32 = arith.constant 1 : i32
    %0 = arith.muli %arg0, %c1_i32 : i32
    %1 = arith.addi %0, %arg1 : i32
    %c0_i32 = arith.constant 0 : i32
    %c0_i32_0 = arith.constant 0 : i32
    return %1, %c0_i32 : i32, i32
  }
  func.func @transform_1(%arg0: i32, %arg1: i32) -> (i32, i32) {
    %c0_i32 = arith.constant 0 : i32
    %c0_i32_0 = arith.constant 0 : i32
    %c0_i32_1 = arith.constant 0 : i32
    return %c0_i32, %c0_i32_0 : i32, i32
  }
  func.func @transform_2(%arg0: i32, %arg1: i32) -> (i32, i32) {
    %c0_i32 = arith.constant 0 : i32
    %c0_i32_0 = arith.constant 0 : i32
    %c0_i32_1 = arith.constant 0 : i32
    return %c0_i32, %c0_i32_0 : i32, i32
  }
  func.func @transform_3(%arg0: i32, %arg1: i32) -> (i32, i32) {
    %c0_i32 = arith.constant 0 : i32
    %c0_i32_0 = arith.constant 0 : i32
    %c0_i32_1 = arith.constant 0 : i32
    return %c0_i32, %c0_i32_0 : i32, i32
  }
  func.func @transform_4(%arg0: i32, %arg1: i32) -> (i32, i32) {
    %c0_i32 = arith.constant 0 : i32
    %c0_i32_0 = arith.constant 0 : i32
    %c0_i32_1 = arith.constant 0 : i32
    return %c0_i32, %c0_i32_0 : i32, i32
  }
  func.func @transform_5(%arg0: i32, %arg1: i32) -> (i32, i32, i32) {
    %c0_i32 = arith.constant 0 : i32
    %c0_i32_0 = arith.constant 0 : i32
    %c0_i32_1 = arith.constant 0 : i32
    return %arg0, %c0_i32, %c0_i32_0 : i32, i32, i32
  }
  func.func @transform_6(%arg0: i32, %arg1: i32) -> (i32, i32, i32) {
    %c0_i32 = arith.constant 0 : i32
    %c0_i32_0 = arith.constant 0 : i32
    %c0_i32_1 = arith.constant 0 : i32
    return %arg0, %c0_i32, %c0_i32_0 : i32, i32, i32
  }
}

</mosaic_0001>

<bundles_post_ra>
// kernel: model_wrapper_v4_forward.1
= control target key start
LH: loop header
LB: loop body
LE: loop exit
PB: predicated region body
PF: predicated region fallthrough
CT: control target
= control target key end

     0   :  { %12 = vsyncpa [#allocation4], 0  ;;  %s1577_s0 = inlined_call_operand.vmem [shape: bf16[512,36], index: 0, kind: input, shape index: {}]   ;;  %s1578_s1 = inlined_call_operand.vmem [shape: bf16[36,128], index: 1, kind: input, shape index: {}]   ;;  %s1579_s2 = inlined_call_operand.vmem [shape: f32[1,128], index: 2, kind: input, shape index: {}]   ;;  %s1580_s3 = inlined_call_operand.vmem [shape: bf16[128,128], index: 3, kind: input, shape index: {}]   ;;  %s1581_s4 = inlined_call_operand.vmem [shape: f32[1,128], index: 4, kind: input, shape index: {}]   ;;  %s1582_s5 = inlined_call_operand.hbm [shape: f32[2,1,128], index: 5, kind: output, shape index: {0}]   ;;  %s1583_s6 = inlined_call_operand.hbm [shape: f32[2,1,128], index: 6, kind: output, shape index: {1}]  }
   0x1   :  { %14 = vsyncpa [#allocation4 + $0x1], 0 }
   0x2   :  { %15 = vsyncpa [#allocation6], 0 }
   0x3   :  { %17 = vsyncpa [#allocation6 + $0x1], 0  ;;  %s1327_s21 = smov 0   ;;  %s1329_s22 = smov 0  }
   0x4   :  { %s1331_s23 = smov 0   ;;  %s1333_s24 = smov 0  }
   0x5   :  { %s1335_s25 = smov 0   ;;  %s1337_s26 = smov 0  }
   0x6 LB: > { %s945_s27 = sadd.s32 4294967295, %s1286_s26   ;;  %s946_s28 = sadd.s32 4294967294, %s1286_s26   ;;  %s1286_s26 = sphi %s1337_s26, %s23_s26   ;;  %s1282_s25 = sphi %s1335_s25, %s1590_s25   ;;  %s1278_s24 = sphi %s1333_s24, %s1589_s24   ;;  %s1274_s23 = sphi %s1331_s23, %s1588_s23   ;;  %s1270_s22 = sphi %s1329_s22, %s1587_s22   ;;  %s1266_s21 = sphi %s1327_s21, %s1586_s21  }
   0x7   : > { %s35_s29 = sadd.s32 1, %s1282_s25  ;;  %s154_s30 = sadd.s32 1, %s1274_s23 }
   0x8   : > { %p37_p0 = scmp.ge.s32.totalorder %s35_s29, 2  ;;  %p164_p1 = scmp.ne.s32.totalorder %s1274_s23, %s1270_s22 }
   0x9   : > { %p165_p2 = scmp.eq.s32.totalorder %s945_s27, 1  ;;  %p170_p3 = scmp.ne.s32.totalorder %s1270_s22, %s1266_s21 }
   0xa   : > { %s1592_s29 = smov (%p37_p0, %s35_s29), 0  ;;  %p171_p5 = scmp.eq.s32.totalorder %s946_s28, 1 }
   0xb   : > { %p1367_p4 = por %p165_p2, %p164_p1  ;;  %s151_s8 = ssub.s32 %s1282_s25, %s1592_s29 }
   0xc   : > { %p949_p6 = scmp.ge.s32.totalorder %s1286_s26, 1  ;;  %p152_p7 = scmp.eq.s32.totalorder %s151_s8, 0 }
   0xd   : > { %p1374_p8 = por %p171_p5, %p170_p3  ;;  %p238_p9 = scmp.lt.s32.totalorder %s1286_s26, 3 }
   0xe   : > { %s1380_s10 = scalar_select %p152_p7, %s1274_s23, %s154_s30  }
   0xf   : > { %p239_p10 = pnand %p949_p6, %p238_p9 }
  0x10   : > { %v1149_v0 = vld [vmem:[%s1578_s1] sm:$0xff] (!%p239_p10)   ;;  %v1150_v1 = vld [vmem:[%s1578_s1 + $0x8] sm:$0xff] (!%p239_p10)   ;;  %s950_s15 = sshll.u32 (!%p239_p10), %s1278_s24, 5  ;;  %v1151_v2 = vld [vmem:[%s1578_s1 + $0x10] ss:$0 sps:$4 sm:$0x33] (!%p239_p10)  }
  0x11   : > { %242 = sbr.rel (%p239_p10) target bundleno = 554 (0x22a), region = 40  ;;  %1028 = vmatprep.subr.bf16.mxu0 (!%p239_p10), %v1149_v0  ;;  %p274_p11 = scmp.lt.s32.totalorder (!%p239_p10), %s950_s15, 63  ;;  %vm474_vm0 = vcmask (!%p239_p10), 1041408   ;;  %vm425_vm1 = vcmask (!%p239_p10), 293888   ;;  %v1168_v20 = vld [vmem:[%s1580_s3] sm:$0xff] (!%p239_p10)   ;;  %v1288_v21 = vmov (!%p239_p10), 0.0  }
  0x12   : > { %1029 = vmatpush3.bf16.msra.mxu0 (!%p239_p10), %v1149_v0  ;;  %v476_v3 = vsel (!%p239_p10), %vm474_vm0, %v1151_v2, 0  ;;  %1066 = vmatprep.subr.bf16.mxu1 (!%p239_p10), %v1288_v21  ;;  %v1169_v22 = vld [vmem:[%s1580_s3 + $0x8] sm:$0xff] (!%p239_p10)   ;;  %v1170_v23 = vld [vmem:[%s1580_s3 + $0x10] sm:$0xff] (!%p239_p10)   ;;  %v1171_v24 = vld [vmem:[%s1580_s3 + $0x18] sm:$0xff] (!%p239_p10)   ;;  %vm1289_vm2 = vmmov (!%p239_p10), 0   ;;  %s1491_s12 = sand.u32 (!%p239_p10), 1, %s1270_s22  }
  0x13   : > { %1030 = vmatprep.subr.bf16.mxu0 (!%p239_p10), %v1150_v1  ;;  %1067 = vmatpush3.bf16.msra.mxu1 (!%p239_p10), %v1168_v20  ;;  %v1172_v25 = vld [vmem:[%s1580_s3 + $0x20] sm:$0xff] (!%p239_p10)   ;;  %v1173_v26 = vld [vmem:[%s1580_s3 + $0x28] sm:$0xff] (!%p239_p10)   ;;  %v1174_v27 = vld [vmem:[%s1580_s3 + $0x30] sm:$0xff] (!%p239_p10)   ;;  %s271_s13 = scalar_lea.vmem (!%p239_p10), [#allocation5], %s1491_s12  ;;  %s996_s14 = sshll.u32 (!%p239_p10), %s1278_s24, 4 }
  0x14   : > { %1068 = vmatprep.subr.bf16.mxu1 (!%p239_p10), %v1288_v21  ;;  %1082 = vmatprep.mubr.msk.bf16.mxu1 (!%p239_p10), %vm1289_vm2, %v1288_v21  ;;  %v1175_v28 = vld [vmem:[%s1580_s3 + $0x38] sm:$0xff] (!%p239_p10)   ;;  %v1456_v29 = vld [vmem:[%s1579_s2] ss:$0 sm:$0xff] (!%p239_p10)  ;;  %s1500_s17 = scalar_lea.hbm (!%p239_p10), %s1583_s6, %s996_s14  ;;  %s829_s19 = scalar_lea.sflag (!%p239_p10), [#allocation6], %s1491_s12 }
  0x16   : > { %1031 = vmatpush3.bf16.msra.mxu0 (!%p239_p10), %v1150_v1 }
  0x17   : > { %1086 = vmatprep.subr.msk.bf16.mxu0 (!%p239_p10), %vm474_vm0, %v1151_v2  ;;  %1069 = vmatpush3.bf16.msra.mxu1 (!%p239_p10), %v1169_v22 }
  0x18   : > { %s1594_s15 = smov (!%p274_p11, %s950_s15), 63  ;;  %1070 = vmatprep.subr.bf16.mxu1 %v1288_v21 }
  0x19   : > { %s951_s18 = sshll.u32 %s1594_s15, 2 }
  0x1a   : > { %s1395_s27 = scalar_lea.vmem %s1577_s0, %s951_s18  ;;  %1033 = vmatpush3.bf16.msra.mxu0 %v476_v3  ;;  %s854_s18 = sshll.u32 %s271_s13, 4  ;;  %s855_s18 = int_to_ptr.vmem [resolvable:$true] %s854_s18 }
  0x1b   : > { %v1152_v4 = vld [vmem:[%s1395_s27] sm:$0xff]   ;;  %v1153_v5 = vld [vmem:[%s1395_s27 + $0x8] sm:$0xff]   ;;  %v1154_v6 = vld [vmem:[%s1395_s27 + $0x10] sm:$0xff]   ;;  %1071 = vmatpush3.bf16.msra.mxu1 %v1170_v23  ;;  %s1176_s20 = scalar_lea.vmem %s855_s18, 16 }
  0x1c   : > { %1034 = vmatprep.mubr.msk.bf16.mxu0 %vm425_vm1, %v1152_v4  ;;  %v1155_v7 = vld [vmem:[%s1395_s27 + $0x18] sm:$0xff]   ;;  %v1156_v8 = vld [vmem:[%s1395_s27 + $0x20] sm:$0xff]   ;;  %v1157_v9 = vld [vmem:[%s1395_s27 + $0x28] sm:$0xff]   ;;  %1072 = vmatprep.subr.bf16.mxu1 %v1288_v21  ;;  %p1177_p12 = scmp.ne.s32.totalorder %s855_s18, %s1176_s20 }
  0x1d   : > { %1035 = vmatmul.mubr.msk.bf16.vlgmr.msra.gmra.mrb[0].mxu0 %vm425_vm1, %v1153_v5  ;;  %v1158_v10 = vld [vmem:[%s1395_s27 + $0x30] sm:$0xff]   ;;  %v1159_v11 = vld [vmem:[%s1395_s27 + $0x38] sm:$0xff]   ;;  %v1160_v12 = vld [vmem:[%s1395_s27 + $0x40] sm:$0xff]  }
  0x1e   : > { %1038 = vmatprep.mubr.msk.bf16.mxu0 %vm425_vm1, %v1154_v6  ;;  %v1161_v13 = vld [vmem:[%s1395_s27 + $0x48] sm:$0xff]   ;;  %v1162_v14 = vld [vmem:[%s1395_s27 + $0x50] sm:$0xff]   ;;  %v1163_v15 = vld [vmem:[%s1395_s27 + $0x58] sm:$0xff]   ;;  %p1178_p13 = pnand %p1177_p12, %p1367_p4 }
  0x1f   : > { %v1164_v16 = vld [vmem:[%s1395_s27 + $0x60] sm:$0xff]   ;;  %v1165_v17 = vld [vmem:[%s1395_s27 + $0x68] sm:$0xff]   ;;  %v1166_v18 = vld [vmem:[%s1395_s27 + $0x70] sm:$0xff]   ;;  %1073 = vmatpush3.bf16.msra.mxu1 %v1171_v24 }
  0x20   : > { %v1167_v19 = vld [vmem:[%s1395_s27 + $0x78] sm:$0xff]   ;;  %1074 = vmatprep.subr.bf16.mxu1 %v1288_v21  ;;  %p1179_p0 = pneg %p1178_p13  ;;  %s1290_s27 = smov [#allocation5]  }
  0x21   : > { %s1180_s28 = sshll.u32 %s1290_s27, 4  ;;  %s1181_s28 = int_to_ptr.vmem [resolvable:$false] %s1180_s28 }
  0x22   : > { %s1182_s30 = scalar_lea.vmem %s1181_s28, 32  ;;  %p1183_p1 = scmp.lt.s32.totalorder %s855_s18, %s1181_s28 }
  0x23   : > { %1075 = vmatpush3.bf16.msra.mxu1 %v1172_v25  ;;  %p1184_p2 = scmp.lt.s32.totalorder %s1182_s30, %s1176_s20 }
  0x24   : > { %1076 = vmatprep.subr.bf16.mxu1 %v1288_v21 }
  0x25   : > { %1039 = vmatmul.mubr.msk.bf16.gmra.mrb[4].mxu0 %vm425_vm1, %v1155_v7  ;;  %p1185_p3 = por %p1184_p2, %p1183_p1 }
  0x26   : > { %1042 = vmatprep.mubr.msk.bf16.mxu0 %vm425_vm1, %v1156_v8 }
  0x27   : > { %1077 = vmatpush3.bf16.msra.mxu1 %v1173_v26  ;;  %p1186_p5 = pnand %p1185_p3, %p1179_p0 }
  0x28   : > { %1078 = vmatprep.subr.bf16.mxu1 %v1288_v21 }
  0x2b   : > { %1079 = vmatpush3.bf16.msra.mxu1 %v1174_v27 }
  0x2c   : > { %1080 = vmatprep.subr.bf16.mxu1 %v1288_v21 }
  0x2d   : > { %1043 = vmatmul.mubr.msk.bf16.gmra.mrb[8].mxu0 %vm425_vm1, %v1157_v9 }
  0x2e   : > { %1046 = vmatprep.mubr.msk.bf16.mxu0 %vm425_vm1, %v1158_v10 }
  0x2f   : > { %1081 = vmatpush3.bf16.msra.mxu1 %v1175_v28 }
  0x35   : > { %1047 = vmatmul.mubr.msk.bf16.gmra.mrb[12].mxu0 %vm425_vm1, %v1159_v11 }
  0x36   : > { %1050 = vmatprep.mubr.msk.bf16.mxu0 %vm425_vm1, %v1160_v12 }
  0x3d   : > { %1051 = vmatmul.mubr.msk.bf16.gmra.mrb[16].mxu0 %vm425_vm1, %v1161_v13 }
  0x3e   : > { %1054 = vmatprep.mubr.msk.bf16.mxu0 %vm425_vm1, %v1162_v14 }
  0x45   : > { %1055 = vmatmul.mubr.msk.bf16.gmra.mrb[20].mxu0 %vm425_vm1, %v1163_v15 }
  0x46   : > { %1058 = vmatprep.mubr.msk.bf16.mxu0 %vm425_vm1, %v1164_v16 }
  0x4d   : > { %1059 = vmatmul.mubr.msk.bf16.gmra.mrb[24].mxu0 %vm425_vm1, %v1165_v17 }
  0x4e   : > { %1062 = vmatprep.mubr.msk.bf16.mxu0 %vm425_vm1, %v1166_v18 }
  0x55   : > { %1063 = vmatmul.mubr.msk.bf16.gmra.mrb[28].mxu0 %vm425_vm1, %v1167_v19 }
  0xf0   : > { %v1036_v30 = vpop.f32.mrb[0].mxu0 }
  0xf1   : > { %v512_v31 = vpop.f32.mrb[1].mxu0  ;;  %v521_v35 = vadd.f32 %v1036_v30, %v1456_v29 }
  0xf2   : > { %v513_v32 = vadd.f32 %v1456_v29, %v512_v31  ;;  %v1037_v33 = vpop.f32.mrb[2].mxu0 }
  0xf3   : > { %v515_v34 = vpop.f32.mrb[3].mxu0  ;;  %v524_v38 = vadd.f32 %v1037_v33, %v1456_v29  ;;  %v641_v40 = vmax.f32 %v521_v35, 0.0 }
  0xf4   : > { %v516_v36 = vadd.f32 %v1456_v29, %v515_v34  ;;  %v639_v37 = vmax.f32 %v513_v32, 0.0 }
  0xf5   : > { %v642_v44 = vmax.f32 %v524_v38, 0.0 }
  0xf6   : > { %v640_v39 = vmax.f32 %v516_v36, 0.0 }
  0xf8   : > { %v672_v41 = vadd.f32 %v640_v39, %v639_v37  ;;  %v1040_v42 = vpop.f32.mrb[4].mxu0 }
  0xf9   : > { %v528_v43 = vpop.f32.mrb[5].mxu0  ;;  %v537_v49 = vadd.f32 %v1040_v42, %v1456_v29 }
  0xfa   : > { %v673_v45 = vadd.f32 %v672_v41, %v641_v40  ;;  %v529_v46 = vadd.f32 %v1456_v29, %v528_v43  ;;  %v1041_v47 = vpop.f32.mrb[6].mxu0 }
  0xfb   : > { %v531_v48 = vpop.f32.mrb[7].mxu0  ;;  %v540_v54 = vadd.f32 %v1041_v47, %v1456_v29  ;;  %v645_v56 = vmax.f32 %v537_v49, 0.0 }
  0xfc   : > { %v643_v50 = vmax.f32 %v529_v46, 0.0  ;;  %v674_v51 = vadd.f32 %v673_v45, %v642_v44  ;;  %v532_v52 = vadd.f32 %v1456_v29, %v531_v48 }
  0xfd   : > { %v646_v60 = vmax.f32 %v540_v54, 0.0 }
  0xfe   : > { %v675_v53 = vadd.f32 %v674_v51, %v643_v50  ;;  %v644_v55 = vmax.f32 %v532_v52, 0.0 }
 0x100   : > { %v676_v57 = vadd.f32 %v675_v53, %v644_v55  ;;  %v1044_v58 = vpop.f32.mrb[8].mxu0 }
 0x101   : > { %v544_v59 = vpop.f32.mrb[9].mxu0  ;;  %v553_v1 = vadd.f32 %v1044_v58, %v1456_v29 }
 0x102   : > { %v677_v61 = vadd.f32 %v676_v57, %v645_v56  ;;  %v545_v62 = vadd.f32 %v1456_v29, %v544_v59  ;;  %v1045_v63 = vpop.f32.mrb[10].mxu0 }
 0x103   : > { %v547_v0 = vpop.f32.mrb[11].mxu0  ;;  %v556_v6 = vadd.f32 %v1045_v63, %v1456_v29  ;;  %v649_v8 = vmax.f32 %v553_v1, 0.0 }
 0x104   : > { %v647_v2 = vmax.f32 %v545_v62, 0.0  ;;  %v678_v3 = vadd.f32 %v677_v61, %v646_v60  ;;  %v548_v4 = vadd.f32 %v1456_v29, %v547_v0 }
 0x105   : > { %v650_v12 = vmax.f32 %v556_v6, 0.0 }
 0x106   : > { %v679_v5 = vadd.f32 %v678_v3, %v647_v2  ;;  %v648_v7 = vmax.f32 %v548_v4, 0.0 }
 0x108   : > { %v680_v9 = vadd.f32 %v679_v5, %v648_v7  ;;  %v1048_v10 = vpop.f32.mrb[12].mxu0 }
 0x109   : > { %v560_v11 = vpop.f32.mrb[13].mxu0  ;;  %v569_v17 = vadd.f32 %v1048_v10, %v1456_v29 }
 0x10a   : > { %v681_v13 = vadd.f32 %v680_v9, %v649_v8  ;;  %v561_v14 = vadd.f32 %v1456_v29, %v560_v11  ;;  %v1049_v15 = vpop.f32.mrb[14].mxu0 }
 0x10b   : > { %v563_v16 = vpop.f32.mrb[15].mxu0  ;;  %v572_v22 = vadd.f32 %v1049_v15, %v1456_v29  ;;  %v653_v24 = vmax.f32 %v569_v17, 0.0 }
 0x10c   : > { %v651_v18 = vmax.f32 %v561_v14, 0.0  ;;  %v682_v19 = vadd.f32 %v681_v13, %v650_v12  ;;  %v564_v20 = vadd.f32 %v1456_v29, %v563_v16 }
 0x10d   : > { %v654_v28 = vmax.f32 %v572_v22, 0.0 }
 0x10e   : > { %v683_v21 = vadd.f32 %v682_v19, %v651_v18  ;;  %v652_v23 = vmax.f32 %v564_v20, 0.0 }
 0x110   : > { %v684_v25 = vadd.f32 %v683_v21, %v652_v23  ;;  %v1052_v26 = vpop.f32.mrb[16].mxu0 }
 0x111   : > { %v576_v27 = vpop.f32.mrb[17].mxu0  ;;  %v585_v34 = vadd.f32 %v1052_v26, %v1456_v29 }
 0x112   : > { %v685_v30 = vadd.f32 %v684_v25, %v653_v24  ;;  %v577_v31 = vadd.f32 %v1456_v29, %v576_v27  ;;  %v1053_v32 = vpop.f32.mrb[18].mxu0 }
 0x113   : > { %v579_v33 = vpop.f32.mrb[19].mxu0  ;;  %v588_v39 = vadd.f32 %v1053_v32, %v1456_v29  ;;  %v657_v41 = vmax.f32 %v585_v34, 0.0 }
 0x114   : > { %v655_v35 = vmax.f32 %v577_v31, 0.0  ;;  %v686_v36 = vadd.f32 %v685_v30, %v654_v28  ;;  %v580_v37 = vadd.f32 %v1456_v29, %v579_v33 }
 0x115   : > { %v658_v45 = vmax.f32 %v588_v39, 0.0 }
 0x116   : > { %v687_v38 = vadd.f32 %v686_v36, %v655_v35  ;;  %v656_v40 = vmax.f32 %v580_v37, 0.0 }
 0x118   : > { %v688_v42 = vadd.f32 %v687_v38, %v656_v40  ;;  %v1056_v43 = vpop.f32.mrb[20].mxu0 }
 0x119   : > { %v592_v44 = vpop.f32.mrb[21].mxu0  ;;  %v601_v50 = vadd.f32 %v1056_v43, %v1456_v29 }
 0x11a   : > { %v689_v46 = vadd.f32 %v688_v42, %v657_v41  ;;  %v593_v47 = vadd.f32 %v1456_v29, %v592_v44  ;;  %v1057_v48 = vpop.f32.mrb[22].mxu0 }
 0x11b   : > { %v595_v49 = vpop.f32.mrb[23].mxu0  ;;  %v604_v55 = vadd.f32 %v1057_v48, %v1456_v29  ;;  %v661_v57 = vmax.f32 %v601_v50, 0.0 }
 0x11c   : > { %v659_v51 = vmax.f32 %v593_v47, 0.0  ;;  %v690_v52 = vadd.f32 %v689_v46, %v658_v45  ;;  %v596_v53 = vadd.f32 %v1456_v29, %v595_v49 }
 0x11d   : > { %v662_v61 = vmax.f32 %v604_v55, 0.0 }
 0x11e   : > { %v691_v54 = vadd.f32 %v690_v52, %v659_v51  ;;  %v660_v56 = vmax.f32 %v596_v53, 0.0 }
 0x120   : > { %v692_v58 = vadd.f32 %v691_v54, %v660_v56  ;;  %v1060_v59 = vpop.f32.mrb[24].mxu0 }
 0x121   : > { %v608_v60 = vpop.f32.mrb[25].mxu0  ;;  %v617_v2 = vadd.f32 %v1060_v59, %v1456_v29 }
 0x122   : > { %v693_v62 = vadd.f32 %v692_v58, %v661_v57  ;;  %v609_v63 = vadd.f32 %v1456_v29, %v608_v60  ;;  %v1061_v0 = vpop.f32.mrb[26].mxu0 }
 0x123   : > { %v611_v1 = vpop.f32.mrb[27].mxu0  ;;  %v620_v7 = vadd.f32 %v1061_v0, %v1456_v29  ;;  %v665_v9 = vmax.f32 %v617_v2, 0.0 }
 0x124   : > { %v663_v3 = vmax.f32 %v609_v63, 0.0  ;;  %v694_v4 = vadd.f32 %v693_v62, %v662_v61  ;;  %v612_v5 = vadd.f32 %v1456_v29, %v611_v1 }
 0x125   : > { %v666_v13 = vmax.f32 %v620_v7, 0.0 }
 0x126   : > { %v695_v6 = vadd.f32 %v694_v4, %v663_v3  ;;  %v664_v8 = vmax.f32 %v612_v5, 0.0 }
 0x128   : > { %v696_v10 = vadd.f32 %v695_v6, %v664_v8  ;;  %v1064_v11 = vpop.f32.mrb[28].mxu0 }
 0x129   : > { %v624_v12 = vpop.f32.mrb[29].mxu0  ;;  %v633_v18 = vadd.f32 %v1064_v11, %v1456_v29 }
 0x12a   : > { %v697_v14 = vadd.f32 %v696_v10, %v665_v9  ;;  %v625_v15 = vadd.f32 %v1456_v29, %v624_v12  ;;  %v1065_v16 = vpop.f32.mrb[30].mxu0 }
 0x12b   : > { %v627_v17 = vpop.f32.mrb[31].mxu0  ;;  %v636_v23 = vadd.f32 %v1065_v16, %v1456_v29  ;;  %v669_v25 = vmax.f32 %v633_v18, 0.0 }
 0x12c   : > { %v667_v19 = vmax.f32 %v625_v15, 0.0  ;;  %v698_v20 = vadd.f32 %v697_v14, %v666_v13  ;;  %v628_v21 = vadd.f32 %v1456_v29, %v627_v17 }
 0x12d   : > { %v670_v27 = vmax.f32 %v636_v23, 0.0 }
 0x12e   : > { %v699_v22 = vadd.f32 %v698_v20, %v667_v19  ;;  %v668_v24 = vmax.f32 %v628_v21, 0.0 }
 0x130   : > { %v700_v26 = vadd.f32 %v699_v22, %v668_v24 }
 0x132   : > { %v701_v28 = vadd.f32 %v700_v26, %v669_v25 }
 0x134   : > { %v702_v30 = vadd.f32 %v701_v28, %v670_v27 }
 0x136   : > { %v709_v31 = vrot.slane %v702_v30, 4 }
 0x138   : > { %v710_v32 = vadd.f32 %v709_v31, %v702_v30 }
 0x13a   : > { %v711_v33 = vrot.slane %v710_v32, 2 }
 0x13c   : > { %v712_v34 = vadd.f32 %v711_v33, %v710_v32 }
 0x13e   : > { %v713_v35 = vrot.slane %v712_v34, 1 }
 0x140   : > { %v714_v36 = vadd.f32 %v713_v35, %v712_v34 }
 0x142   : > { %v715_v29 = vmul.f32 0.00390625, %v714_v36 }
 0x144   : > { %v717_v37 = vpack.c.bf16 %v715_v29, %v715_v29  ;;  %716 = vst [vmem:[%s271_s13] sm:$0x1] %v715_v29 }
 0x146   : > { %1083 = vmatmul.mubr.bf16.vlgmr.msra.gmra.mrb[0].mxu1 %v717_v37 }
 0x147   : > { %1189 = shalt.err (!%p1186_p5)
}
 0x148   : > { %s1190_s8 = scalar_lea.hbm %s1500_s17, 16  ;;  %s1194_s15 = scalar_lea.hbm %s1583_s6, 32 }
 0x149   : > { %p1191_p6 = scmp.ne.s32.totalorder %s1500_s17, %s1190_s8  ;;  %p1195_p10 = scmp.lt.u32.totalorder %s1500_s17, %s1583_s6 }
 0x14a   : > { %p1196_p11 = scmp.lt.u32.totalorder %s1194_s15, %s1190_s8  ;;  %p1198_p13 = scmp.lt.u32.totalorder %s1190_s8, %s1500_s17 }
 0x14b   : > { %p1192_p7 = pnand %p1191_p6, %p1367_p4 }
 0x14c   : > { %p1197_p12 = por %p1196_p11, %p1195_p10 }
 0x14d   : > { %p1193_p9 = pneg %p1192_p7 }
 0x14e   : > { %p1199_p0 = por %p1198_p13, %p1197_p12 }
 0x150   : > { %p1200_p1 = pnand %p1199_p0, %p1193_p9 }
 0x152   : > { %1203 = shalt.err (!%p1200_p1)
}
 0x153   : > { %1088 = dma.vmem_to_hbm [thread:$0]  (%p1367_p4), %s855_s18, 16, %s1500_s17, %s829_s19   ;;  %v734_v38 = vld [vmem:[%s1581_s4] sm:$0x1] }
 0x154   : > { %s265_s30 = scalar_lea.vmem [#allocation3], %s1491_s12  ;;  %s1529_s15 = scalar_lea.hbm %s1582_s5, %s996_s14 }
 0x155   : > { %s841_s11 = sshll.u32 %s265_s30, 4  ;;  %s825_s17 = scalar_lea.sflag [#allocation4], %s1491_s12  ;;  %s1531_s11 = int_to_ptr.vmem [resolvable:$true] %s841_s11 }
 0x156   : > { %s1204_s18 = scalar_lea.vmem %s1531_s11, 16  ;;  %s1291_s24 = smov [#allocation3]  }
 0x157   : > { %p1205_p2 = scmp.ne.s32.totalorder %s1531_s11, %s1204_s18  ;;  %s1208_s19 = sshll.u32 %s1291_s24, 4  ;;  %s1209_s19 = int_to_ptr.vmem [resolvable:$false] %s1208_s19 }
 0x158   : > { %s1210_s16 = scalar_lea.vmem %s1209_s19, 32  ;;  %p1211_p6 = scmp.lt.s32.totalorder %s1531_s11, %s1209_s19 }
 0x159   : > { %p1206_p3 = pnand %p1205_p2, %p1367_p4  ;;  %p1212_p7 = scmp.lt.s32.totalorder %s1210_s16, %s1204_s18 }
 0x15b   : > { %p1207_p5 = pneg %p1206_p3  ;;  %p1213_p9 = por %p1212_p7, %p1211_p6 }
 0x15d   : > { %p1214_p10 = pnand %p1213_p9, %p1207_p5 }
 0x219   : > { %v817_v39 = vpop.f32.mrb[0].mxu1 }
 0x21a   : > { %v818_v40 = vadd.f32 %v817_v39, %v734_v38  ;;  %v1084_v41 = vpop.f32.mrb[1].mxu1 }
 0x21b   : > { %v820_v42 = vpop.f32.mrb[2].mxu1 }
 0x21c   : > { %823 = vst [vmem:[%s265_s30] sm:$0x1] %v818_v40  ;;  %v1085_v43 = vpop.f32.mrb[3].mxu1 }
 0x21d   : > { %1217 = shalt.err (!%p1214_p10)
}
 0x21e   : > { %s1218_s12 = scalar_lea.hbm %s1529_s15, 16  ;;  %s1222_s20 = scalar_lea.hbm %s1582_s5, 32 }
 0x21f   : > { %p1219_p11 = scmp.ne.s32.totalorder %s1529_s15, %s1218_s12  ;;  %p1223_p0 = scmp.lt.u32.totalorder %s1529_s15, %s1582_s5 }
 0x220   : > { %p1224_p1 = scmp.lt.u32.totalorder %s1222_s20, %s1218_s12  ;;  %p1226_p3 = scmp.lt.u32.totalorder %s1218_s12, %s1529_s15 }
 0x221   : > { %p1220_p12 = pnand %p1219_p11, %p1367_p4 }
 0x222   : > { %p1225_p2 = por %p1224_p1, %p1223_p0 }
 0x223   : > { %p1221_p13 = pneg %p1220_p12 }
 0x224   : > { %p1227_p5 = por %p1226_p3, %p1225_p2 }
 0x226   : > { %p1228_p6 = pnand %p1227_p5, %p1221_p13 }
 0x228   : > { %1231 = shalt.err (!%p1228_p6)
}
 0x229   : > { %1087 = dma.vmem_to_hbm [thread:$0]  (%p1367_p4), %s1531_s11, 16, %s1529_s15, %s825_s17  }
 0x22a PF: > { %p1098_p7 = scmp.ge.s32.totalorder %s1286_s26, 2  ;;  %s866_s8 = sand.u32 1, %s1266_s21  }
 0x22b   : > { %s867_s13 = scalar_lea.sflag [#allocation4], %s866_s8 }
 0x22c   : > { %p1092_p9 = pnand %p1098_p7, %p1374_p8 }
 0x22e   : > { %1257 = dma.done.wait (!%p1092_p9), %s867_s13, 16  }
 0x22f   : > { %1259 = vsyncadd (!%p1092_p9), %s867_s13, 4294967280  ;;  %s875_s18 = scalar_lea.sflag [#allocation6], %s866_s8 }
 0x230   : > { %1261 = dma.done.wait (!%p1092_p9), %s875_s18, 16  }
 0x231   : > { %1263 = vsyncadd (!%p1092_p9), %s875_s18, 4294967280  ;;  %s23_s26 = sadd.s32 1, %s1286_s26   ;;  %s1586_s21 = smov %s1270_s22 }
 0x232   : > { %p20_p10 = scmp.ge.s32.totalorder %s23_s26, 4   ;;  %s1587_s22 = smov %s1274_s23 }
 0x233   : > { %s1588_s23 = smov %s1380_s10  ;;  %s1589_s24 = smov %s1282_s25 }
 0x234   : > { %s1590_s25 = smov %s1592_s29  ;;  %22 = sbr.rel (!%p20_p10) target bundleno = 6 (0x6), region = 100 }
 0x23b   :  { %879 = vsyncpa [#allocation4], 1 }
 0x23c   :  { %881 = vsyncpa [#allocation4 + $0x1], 1 }
 0x23d   :  { %882 = vsyncpa [#allocation6], 1 }
 0x23e   :  { %884 = vsyncpa [#allocation6 + $0x1], 1 }

</bundles_post_ra>
